<compile_context>
chip_gen: v7x
topology: tpu7x:2x2x1
jax: 0.10.0
libtpu: 0.0.40
codegen_flags: <defaults>
</compile_context>

<pallas_src>
import jax
import jax.numpy as jnp
from jax.experimental import pallas as pl
from jax.experimental.pallas import tpu as pltpu


def _add_embedding_kernel(x_ref, e_ref, o_ref):
    # x_ref / o_ref: (TB, TC) lane-dense blocks; e_ref: (1, TC) shared embedding strip.
    # (1, TC) + (TB, TC) is a sublane-only broadcast (cheap VPU work); TC is a multiple
    # of 128 so every store is a full-width unmasked vst.
    o_ref[...] = x_ref[...] + e_ref[...]


def _pick_tile(total, align, target):
    """Largest t <= target with t % align == 0 and total % t == 0; else full extent."""
    if total <= target:
        return total
    t = (target // align) * align
    while t >= align:
        if total % t == 0:
            return t
        t -= align
    return total  # fall back to full extent (always a legal block dim)


def feature_embedding_forward(X, emb_rows, *, donate_x=False):
    """X: (B, N, D); emb_rows: (N, D) already concat/tiled. Returns X + emb_rows[None]."""
    B, N, D = X.shape
    assert emb_rows.shape == (N, D), (emb_rows.shape, (N, D))
    C = N * D

    # Wrapper-side reshape to a lane-dense 2D layout (layout plumbing, not compute).
    x2 = X.reshape(B, C)
    e2 = emb_rows.reshape(1, C).astype(X.dtype)

    bytes_per_elt = jnp.dtype(X.dtype).itemsize

    # Column tile: big multiple of 128 lanes; fall back to the full (legal) extent.
    tc = _pick_tile(C, 128, 4096)
    # Batch/sublane tile: aim for ~2 MiB per X block to amortize per-step overhead while
    # keeping double-buffered in/out blocks + the E strip well inside every generation's
    # scoped VMEM budget (v7x 64 MiB physical, v5e 16 MiB scoped default raised below).
    tb_target = max(8, (2 * 1024 * 1024) // max(1, tc * bytes_per_elt))
    tb = _pick_tile(B, 8, tb_target)

    grid = (B // tb, C // tc)

    # 2x double-buffered X-in + 2x out + 2x E strip, with 2x headroom, clamped to 32 MiB
    # (>= v5e's 16 MiB scoped default, <= v7x's 64 MiB physical VMEM).
    vmem_needed = (2 * tb * tc + 2 * tb * tc + 2 * tc) * bytes_per_elt
    vmem_limit = int(min(max(2 * vmem_needed, 16 * 1024 * 1024), 32 * 1024 * 1024))

    extra_kwargs = {}
    if donate_x:
        # Callers that do not reuse X can alias it to the output to drop one B*N*D HBM
        # allocation (does not change HBM traffic, only allocator pressure).
        extra_kwargs["input_output_aliases"] = {0: 0}

    out2 = pl.pallas_call(
        _add_embedding_kernel,
        out_shape=jax.ShapeDtypeStruct((B, C), X.dtype),
        grid_spec=pltpu.PrefetchScalarGridSpec(
            num_scalar_prefetch=0,
            grid=grid,
            in_specs=[
                pl.BlockSpec((tb, tc), lambda b, c: (b, c)),   # X tile
                pl.BlockSpec((1, tc), lambda b, c: (0, c)),    # shared E strip (col only)
            ],
            out_specs=pl.BlockSpec((tb, tc), lambda b, c: (b, c)),
        ),
        compiler_params=pltpu.CompilerParams(
            dimension_semantics=("parallel", "parallel"),  # megacore-shardable on v7x
            vmem_limit_bytes=vmem_limit,
        ),
        **extra_kwargs,
    )(x2, e2)

    return out2.reshape(B, N, D)


class FeatureEmbeddingPallas:
    """JAX/Pallas port of Feature_embedding.

    time_code mirrors the FIDDLE convention: time_code[0] are the static feature
    indices, time_code[1] are the time-series feature indices for one time step,
    and len(time_code) - 1 is the number of time steps to tile over.
    """

    def __init__(self, dim_embedding, time_code, key):
        self.time_code = time_code
        self.dim_embedding = dim_embedding
        self.total_features = len(time_code[0]) + len(time_code[1])
        self.time_series_start = int(time_code[1][0])
        # nn.Embedding default init is N(0, 1); reproduce deterministically.
        self.weight = jax.random.normal(
            key, (self.total_features, dim_embedding), dtype=jnp.float32
        )

    def _build_embedding_rows(self):
        # emb = weight[arange(total_features)] == weight (identity gather), then
        # concat(static rows, tiled time-series rows). Cheap glue relative to the
        # B*N*D elementwise add; for very large n_steps one could instead select the
        # weight block per time-step-aligned tile in the E index_map to avoid
        # materializing the tiled table in HBM.
        ts_start = self.time_series_start
        n_steps = len(self.time_code) - 1
        static_rows = jnp.arange(0, ts_start, dtype=jnp.int32)
        ts_rows = jnp.arange(ts_start, self.total_features, dtype=jnp.int32)
        rows = jnp.concatenate([static_rows, jnp.tile(ts_rows, n_steps)])
        return self.weight[rows]  # (N, D)

    def __call__(self, X):
        E = self._build_embedding_rows()
        return feature_embedding_forward(X, E)


if __name__ == "__main__":
    key = jax.random.PRNGKey(0)
    k_w, k_x = jax.random.split(key)

    # Small, shape-consistent example:
    #   4 static features (indices 0..3), 6 time-series features per step
    #   (indices 4..9), 2 time steps => N = 4 + 6*2 = 16 rows per sample.
    time_code = [
        [0, 1, 2, 3],                # static feature indices
        [4, 5, 6, 7, 8, 9],          # time-series feature indices (step 0)
        [10, 11, 12, 13, 14, 15],    # time-series feature indices (step 1)
    ]
    dim_embedding = 32
    batch = 2
    n_rows = len(time_code[0]) + len(time_code[1]) * (len(time_code) - 1)  # 16

    module = FeatureEmbeddingPallas(dim_embedding, time_code, k_w)

    X = jax.random.normal(k_x, (batch, n_rows, dim_embedding), dtype=jnp.float32)

    out = module(X)
    out = jax.block_until_ready(out)

    # Pure-JAX reference (same semantics as the torch forward).
    E_ref = module._build_embedding_rows()
    ref = X + E_ref[None, :, :]
    assert out.shape == (batch, n_rows, dim_embedding)
    assert jnp.allclose(out, ref, atol=1e-6), "mismatch vs reference"

    print("KERNEL_OK")
</pallas_src>

<mosaic_0001>
module attributes {stable_mosaic.version = 11 : i64} {
  func.func @_add_embedding_kernel(%arg0: i32, %arg1: i32, %arg2: memref<2x512xf32, #tpu.memory_space<vmem>>, %arg3: memref<1x512xf32, #tpu.memory_space<vmem>>, %arg4: memref<2x512xf32, #tpu.memory_space<vmem>>) attributes {dimension_semantics = [#tpu.dimension_semantics<parallel>, #tpu.dimension_semantics<parallel>], iteration_bounds = array<i64: 1, 1>, scalar_prefetch = 0 : i64, scratch_operands = 0 : i64, tpu.core_type = #tpu.core_type<tc>, window_params = [{transform_indices = @transform_0, window_bounds = array<i64: 2, 512>}, {transform_indices = @transform_1, window_bounds = array<i64: 1, 512>}, {transform_indices = @transform_2, window_bounds = array<i64: 2, 512>}]} {
    %c0 = arith.constant 0 : index
    %c0_0 = arith.constant 0 : index
    %0 = vector.load %arg2[%c0, %c0_0] : memref<2x512xf32, #tpu.memory_space<vmem>>, vector<2x512xf32>
    %c0_1 = arith.constant 0 : index
    %c0_2 = arith.constant 0 : index
    %1 = vector.load %arg3[%c0_1, %c0_2] : memref<1x512xf32, #tpu.memory_space<vmem>>, vector<1x512xf32>
    %2 = vector.broadcast %1 : vector<1x512xf32> to vector<2x512xf32>
    %3 = arith.addf %0, %2 : vector<2x512xf32>
    %c0_3 = arith.constant 0 : index
    %c0_4 = arith.constant 0 : index
    %4 = vector.load %arg4[%c0_3, %c0_4] : memref<2x512xf32, #tpu.memory_space<vmem>>, vector<2x512xf32>
    tpu.vector_store %arg4[%c0_3, %c0_4], %3 {strides = array<i32>} : memref<2x512xf32, #tpu.memory_space<vmem>>, vector<2x512xf32>,
    return
  }
  func.func @transform_0(%arg0: i32, %arg1: i32) -> (i32, i32) {
    %c0_i32 = arith.constant 0 : i32
    return %arg0, %arg1 : i32, i32
  }
  func.func @transform_1(%arg0: i32, %arg1: i32) -> (i32, i32) {
    %c0_i32 = arith.constant 0 : i32
    %c0_i32_0 = arith.constant 0 : i32
    return %c0_i32, %arg1 : i32, i32
  }
  func.func @transform_2(%arg0: i32, %arg1: i32) -> (i32, i32) {
    %c0_i32 = arith.constant 0 : i32
    return %arg0, %arg1 : i32, i32
  }
}

</mosaic_0001>

<bundles_post_ra>
// kernel: tpu_custom_call.1
= control target key start
LH: loop header
LB: loop body
LE: loop exit
PB: predicated region body
PF: predicated region fallthrough
CT: control target
= control target key end

     0   :  { %7 = vsyncpa [#allocation3], 0  ;;  %s222_s0 = inlined_call_operand.hbm [shape: f32[2,512], index: 0, kind: input, shape index: {}]   ;;  %s223_s1 = inlined_call_operand.hbm [shape: f32[1,512], index: 1, kind: input, shape index: {}]   ;;  %s224_s2 = inlined_call_operand.hbm [shape: f32[2,512], index: 2, kind: output, shape index: {}]  }
   0x1   :  { %8 = vsyncpa [#allocation6], 0 }
   0x2   :  { %9 = vsyncpa [#allocation4], 0  ;;  %s167_s9 = smov [#allocation2]   ;;  %s168_s11 = smov [#allocation5]  }
   0x3   :  { %s16_s10 = sshll.u32 %s167_s9, 4  ;;  %s26_s12 = sshll.u32 %s168_s11, 4  ;;  %s17_s10 = int_to_ptr.vmem [resolvable:$true] %s16_s10  ;;  %s27_s12 = int_to_ptr.vmem [resolvable:$true] %s26_s12 }
   0x4   :  { %s95_s15 = scalar_lea.hbm %s222_s0, 128 }
   0x5   :  { %p96_p0 = scmp.ne.s32.totalorder %s222_s0, %s95_s15  ;;  %p99_p1 = scmp.lt.u32.totalorder %s95_s15, %s222_s0 }
   0x7   :  { %p101_p2 = pnand %p99_p1, %p96_p0 }
   0x9   :  { %104 = shalt.err (!%p101_p2)
}
   0xa   :  { %s105_s20 = scalar_lea.vmem %s17_s10, 128  ;;  %p110_p4 = scmp.lt.s32.totalorder %s17_s10, %s17_s10 }
   0xb   :  { %p106_p3 = scmp.ne.s32.totalorder %s17_s10, %s105_s20  ;;  %p111_p5 = scmp.lt.s32.totalorder %s105_s20, %s105_s20 }
   0xd   :  { %p112_p6 = por %p111_p5, %p110_p4 }
   0xf   :  { %p113_p7 = pnand %p112_p6, %p106_p3 }
  0x11   :  { %116 = shalt.err (!%p113_p7)
}
  0x12   :  { %19 = dma.hbm_to_vmem [thread:$0]  %s222_s0, 128, %s17_s10, [#allocation3]  }
  0x13   :  { %s117_s25 = scalar_lea.hbm %s223_s1, 64 }
  0x14   :  { %p118_p8 = scmp.ne.s32.totalorder %s223_s1, %s117_s25  ;;  %p121_p9 = scmp.lt.u32.totalorder %s117_s25, %s223_s1 }
  0x16   :  { %p123_p10 = pnand %p121_p9, %p118_p8 }
  0x18   :  { %126 = shalt.err (!%p123_p10)
}
  0x19   :  { %s127_s30 = scalar_lea.vmem %s27_s12, 64  ;;  %p132_p12 = scmp.lt.s32.totalorder %s27_s12, %s27_s12 }
  0x1a   :  { %p128_p11 = scmp.ne.s32.totalorder %s27_s12, %s127_s30  ;;  %p133_p13 = scmp.lt.s32.totalorder %s127_s30, %s127_s30 }
  0x1c   :  { %p134_p0 = por %p133_p13, %p132_p12 }
  0x1e   :  { %p135_p1 = pnand %p134_p0, %p128_p11 }
  0x20   :  { %138 = shalt.err (!%p135_p1)
}
  0x21   :  { %29 = dma.hbm_to_vmem [thread:$0]  %s223_s1, 64, %s27_s12, [#allocation6]  }
  0x22   :  { %161 = dma.done.wait [#allocation3], 128  }
  0x23   :  { %162 = vsyncadd [#allocation3], 4294967168 }
  0x24   :  { %163 = dma.done.wait [#allocation6], 64  }
  0x25   :  { %164 = vsyncadd [#allocation6], 4294967232  ;;  %v39_v0 = vlaneseq  ;;  %v169_v1 = vmov 1983009808   ;;  %v37_v9 = vld [vmem:[#allocation5] sm:$0xf] }
  0x26   :  { %v58_v2 = vunpack.c.l.s4 %v169_v1  ;;  %v36_v19 = vld [vmem:[#allocation2] sm:$0xff]  ;;  %s170_s1 = smov [#allocation7]  }
  0x27   :  { %v40_v3 = vshrl.u32 %v39_v0, 7  ;;  %s81_s4 = sshll.u32 %s170_s1, 4  ;;  %s82_s4 = int_to_ptr.vmem [resolvable:$true] %s81_s4 }
  0x28   :  { %v59_v4 = vunpack.c.0.s8 %v58_v2  ;;  %s139_s5 = scalar_lea.vmem %s82_s4, 128  ;;  %p144_p3 = scmp.lt.s32.totalorder %s82_s4, %s82_s4 }
  0x29   :  { %v41_v5 = vsub.s32 0, %v40_v3  ;;  %v45_v6 = vsub.s32 1, %v40_v3  ;;  %v49_v7 = vsub.s32 2, %v40_v3  ;;  %v53_v8 = vsub.s32 3, %v40_v3  ;;  %p140_p2 = scmp.ne.s32.totalorder %s82_s4, %s139_s5  ;;  %p145_p4 = scmp.lt.s32.totalorder %s139_s5, %s139_s5 }
  0x2a   :  { %v62_v10 = vsub.s32 %v59_v4, %v40_v3 }
  0x2b   :  { %v42_v11 = vrot.slane %v37_v9, %v41_v5  ;;  %v46_v12 = vrot.slane %v37_v9, %v45_v6  ;;  %v50_v13 = vrot.slane %v37_v9, %v49_v7  ;;  %v54_v14 = vrot.slane %v37_v9, %v53_v8  ;;  %p146_p5 = por %p145_p4, %p144_p3 }
  0x2d   :  { %v55_v15 = vcombine.low %v42_v11, %v46_v12  ;;  %v56_v16 = vcombine.low %v50_v13, %v54_v14  ;;  %p147_p6 = pnand %p146_p5, %p140_p2 }
  0x2f   :  { %v63_v17 = vrot.slane %v55_v15, %v62_v10  ;;  %v70_v18 = vrot.slane %v56_v16, %v62_v10 }
  0x31   :  { %v71_v20 = vcombine.low %v63_v17, %v70_v18 }
  0x33   :  { %v73_v21 = vadd.f32 %v71_v20, %v36_v19 }
  0x35   :  { %74 = vst [vmem:[#allocation7] sm:$0xff] %v73_v21 }
  0x36   :  { %150 = shalt.err (!%p147_p6)
}
  0x37   :  { %s151_s8 = scalar_lea.hbm %s224_s2, 128 }
  0x38   :  { %p152_p7 = scmp.ne.s32.totalorder %s224_s2, %s151_s8  ;;  %p155_p8 = scmp.lt.u32.totalorder %s151_s8, %s224_s2 }
  0x3a   :  { %p157_p9 = pnand %p155_p8, %p152_p7 }
  0x3c   :  { %160 = shalt.err (!%p157_p9)
}
  0x3d   :  { %84 = dma.vmem_to_hbm [thread:$0]  %s82_s4, 128, %s224_s2, [#allocation4]  }
  0x3e   :  { %165 = dma.done.wait [#allocation4], 128  }
  0x3f   :  { %166 = vsyncadd [#allocation4], 4294967168 }
  0x40   :  { %88 = vsyncpa [#allocation3], 1 }
  0x41   :  { %89 = vsyncpa [#allocation6], 1 }
  0x42   :  { %90 = vsyncpa [#allocation4], 1 }

</bundles_post_ra>
